<compile_context>
chip_gen: v7x
topology: tpu7x:2x2x1
jax: 0.10.0
libtpu: 0.0.40
codegen_flags: <defaults>
</compile_context>

<pallas_src>
import functools
import numpy as np

import jax
import jax.numpy as jnp
from jax.experimental import pallas as pl
from jax.experimental.pallas import tpu as pltpu


# ----------------------------------------------------------------------------- utils
def round_up(x, m):
    return ((x + m - 1) // m) * m


# ------------------------------------------------------------------- Pallas matmul
# out = [affine?]( [relu?]( A @ B + bias [+ residual] ) )
#   bias/scale/shift are per output column, packed as rows 0/1/2 of p_ref.
#   NOTE: ReLU is applied BEFORE the scale/shift affine on purpose — the PyTorch
#   head is Conv -> ReLU -> BatchNorm; in the backbone the BN is folded into the
#   weights so scale/shift are unused there.
def _matmul_kernel(a_ref, b_ref, *rest, relu, has_bias, has_affine, has_residual):
    needs_params = has_bias or has_affine
    idx = 0
    p_ref = None
    res_ref = None
    if needs_params:
        p_ref = rest[idx]
        idx += 1
    if has_residual:
        res_ref = rest[idx]
        idx += 1
    o_ref = rest[idx]
    acc_ref = rest[idx + 1]

    k = pl.program_id(2)

    @pl.when(k == 0)
    def _():
        acc_ref[...] = jnp.zeros_like(acc_ref)

    # bf16 x bf16 -> f32 accumulation in the VMEM scratch block.
    acc_ref[...] += jnp.dot(a_ref[...], b_ref[...],
                            preferred_element_type=jnp.float32)

    @pl.when(k == pl.num_programs(2) - 1)
    def _():
        y = acc_ref[...]
        if has_bias:
            y = y + p_ref[0:1, :]
        if has_residual:
            y = y + res_ref[...].astype(jnp.float32)
        if relu:
            y = jnp.maximum(y, 0.0)
        if has_affine:
            y = y * p_ref[1:2, :] + p_ref[2:3, :]
        o_ref[...] = y.astype(o_ref.dtype)


def _pick_k_tile(K):
    """Pick tk in {512, 256, 128} minimizing padded K (prefer larger tk on ties)."""
    best = None
    for c in (512, 256, 128):
        kp = round_up(K, c)
        if best is None or kp < best[0]:
            best = (kp, c)
    return best


def pallas_matmul(a, b, bias=None, scale=None, shift=None, residual=None,
                  relu=False, out_dtype=jnp.bfloat16):
    """a: (M, K), b: (K, N) -> (M, N) in out_dtype with fused per-channel epilogue."""
    M, K = a.shape
    K2, N = b.shape
    assert K == K2
    has_bias = bias is not None
    has_affine = (scale is not None) or (shift is not None)
    has_residual = residual is not None
    needs_params = has_bias or has_affine

    # ---- tile selection: 256x256 output tiles when possible (MXU-friendly) ----
    if M >= 256:
        tm, M_pad = 256, round_up(M, 256)
    else:
        M_pad = round_up(M, 16)          # bf16 sublane pack
        tm = M_pad
    if N >= 256:
        tn, N_pad = 256, round_up(N, 256)
    else:
        N_pad = round_up(N, 128)
        tn = N_pad
    K_pad, tk = _pick_k_tile(K)

    a_p = a.astype(jnp.bfloat16)
    b_p = b.astype(jnp.bfloat16)
    if (M_pad, K_pad) != (M, K):
        a_p = jnp.pad(a_p, ((0, M_pad - M), (0, K_pad - K)))
    if (K_pad, N_pad) != (K, N):
        b_p = jnp.pad(b_p, ((0, K_pad - K), (0, N_pad - N)))

    operands = [a_p, b_p]
    in_specs = [
        pl.BlockSpec((tm, tk), lambda i, j, k: (i, k)),
        pl.BlockSpec((tk, tn), lambda i, j, k: (k, j)),
    ]

    if needs_params:
        def _vec(v, default):
            full = (jnp.full((N,), default, jnp.float32) if v is None
                    else v.astype(jnp.float32).reshape(N))
            return jnp.pad(full, (0, N_pad - N)) if N_pad != N else full
        # Packed epilogue params: row 0 = bias, row 1 = scale, row 2 = shift.
        params = jnp.stack([_vec(bias, 0.0), _vec(scale, 1.0), _vec(shift, 0.0)])
        operands.append(params)
        in_specs.append(pl.BlockSpec((3, tn), lambda i, j, k: (0, j)))

    if has_residual:
        r = residual.astype(jnp.bfloat16)
        if (M_pad, N_pad) != (M, N):
            r = jnp.pad(r, ((0, M_pad - M), (0, N_pad - N)))
        operands.append(r)
        in_specs.append(pl.BlockSpec((tm, tn), lambda i, j, k: (i, j)))

    grid = (M_pad // tm, N_pad // tn, K_pad // tk)
    out_bytes = M_pad * N_pad * jnp.dtype(out_dtype).itemsize
    flops = 2 * M_pad * N_pad * K_pad
    bytes_accessed = ((M_pad * K_pad + K_pad * N_pad) * 2
                      + (M_pad * N_pad * 2 if has_residual else 0)
                      + out_bytes)

    out = pl.pallas_call(
        functools.partial(_matmul_kernel, relu=relu, has_bias=has_bias,
                          has_affine=has_affine, has_residual=has_residual),
        out_shape=jax.ShapeDtypeStruct((M_pad, N_pad), out_dtype),
        grid_spec=pltpu.PrefetchScalarGridSpec(
            num_scalar_prefetch=0,
            grid=grid,
            in_specs=in_specs,
            out_specs=pl.BlockSpec((tm, tn), lambda i, j, k: (i, j)),
            scratch_shapes=[pltpu.VMEM((tm, tn), jnp.float32)],
        ),
        compiler_params=pltpu.CompilerParams(
            dimension_semantics=("parallel", "parallel", "arbitrary"),
        ),
        cost_estimate=pl.CostEstimate(flops=flops, transcendentals=0,
                                      bytes_accessed=bytes_accessed),
    )(*operands)
    if (M_pad, N_pad) != (M, N):
        out = out[:M, :N]
    return out


# ------------------------------------------------ Pallas elementwise max (VPU tree)
def _max_tree_kernel(*refs):
    o_ref = refs[-1]
    m = refs[0][...].astype(jnp.float32)
    for r in refs[1:-1]:
        m = jnp.maximum(m, r[...].astype(jnp.float32))
    o_ref[...] = m.astype(o_ref.dtype)


def pallas_max_tree(xs):
    """Elementwise max of a list of equal-shape (M, C) arrays, row-tiled."""
    M, C = xs[0].shape
    dt = xs[0].dtype
    tm = min(1024, round_up(M, 16))
    M_pad = round_up(M, tm)
    if M_pad != M:
        xs = [jnp.pad(x, ((0, M_pad - M), (0, 0))) for x in xs]
    spec = pl.BlockSpec((tm, C), lambda i: (i, 0))
    out = pl.pallas_call(
        _max_tree_kernel,
        out_shape=jax.ShapeDtypeStruct((M_pad, C), dt),
        grid_spec=pltpu.PrefetchScalarGridSpec(
            num_scalar_prefetch=0,
            grid=(M_pad // tm,),
            in_specs=[spec] * len(xs),
            out_specs=spec,
        ),
        compiler_params=pltpu.CompilerParams(
            dimension_semantics=("parallel",)),
    )(*xs)
    return out[:M] if M_pad != M else out


# --------------------------------------------------------------- conv as matmul
def im2col(x, kh, kw, stride, padding, dilation):
    """x: (B, H, W, C) NHWC -> bf16 (B*Ho*Wo, kh*kw*C) patch matrix."""
    B, H, W, C = x.shape
    x = x.astype(jnp.bfloat16)
    if kh == 1 and kw == 1 and padding == 0 and dilation == 1:
        xs = x[:, ::stride, ::stride, :] if stride != 1 else x
        _, Ho, Wo, _ = xs.shape
        return xs.reshape(B * Ho * Wo, C), Ho, Wo
    xp = jnp.pad(x, ((0, 0), (padding, padding), (padding, padding), (0, 0)))
    Hp, Wp = H + 2 * padding, W + 2 * padding
    Ho = (Hp - (dilation * (kh - 1) + 1)) // stride + 1
    Wo = (Wp - (dilation * (kw - 1) + 1)) // stride + 1
    cols = []
    for i in range(kh):
        for j in range(kw):
            hi, wj = i * dilation, j * dilation
            cols.append(xp[:, hi:hi + (Ho - 1) * stride + 1:stride,
                           wj:wj + (Wo - 1) * stride + 1:stride, :])
    patches = jnp.stack(cols, axis=3)                 # (B, Ho, Wo, kh*kw, C)
    return patches.reshape(B * Ho * Wo, kh * kw * C), Ho, Wo


def conv2d(x, w, bias=None, scale=None, shift=None, relu=False, residual=None,
           stride=1, padding=0, dilation=1, out_dtype=jnp.bfloat16):
    """x: NHWC, w: (O, I, kh, kw) (torch layout)."""
    O, I, kh, kw = w.shape
    cols, Ho, Wo = im2col(x, kh, kw, stride, padding, dilation)
    w_mat = jnp.transpose(w, (2, 3, 1, 0)).reshape(kh * kw * I, O)
    res = None if residual is None else residual.reshape(-1, O)
    out = pallas_matmul(cols, w_mat, bias=bias, scale=scale, shift=shift,
                        relu=relu, residual=res, out_dtype=out_dtype)
    return out.reshape(x.shape[0], Ho, Wo, O)


def conv_transpose2d(x, w, bias, stride, padding, output_padding,
                     scale=None, shift=None, relu=False):
    """x: NHWC, w: (I, O, kh, kw) (torch ConvTranspose layout)."""
    I, O, kh, kw = w.shape
    B, H, W, C = x.shape
    Hd, Wd = (H - 1) * stride + 1, (W - 1) * stride + 1
    xd = jnp.zeros((B, Hd, Wd, C), jnp.bfloat16).at[:, ::stride, ::stride, :].set(
        x.astype(jnp.bfloat16))
    xd = jnp.pad(xd, ((0, 0),
                      (kh - 1 - padding, kh - 1 - padding + output_padding),
                      (kw - 1 - padding, kw - 1 - padding + output_padding),
                      (0, 0)))
    w_conv = jnp.transpose(jnp.flip(w, axis=(2, 3)), (1, 0, 2, 3))  # (O, I, kh, kw)
    return conv2d(xd, w_conv, bias=bias, scale=scale, shift=shift, relu=relu,
                  stride=1, padding=0, dilation=1)


def maxpool3x3_s2(x):
    B, H, W, C = x.shape
    k, s, p = 3, 2, 1
    xp = jnp.pad(x, ((0, 0), (p, p), (p, p), (0, 0)), constant_values=-jnp.inf)
    Ho = (H + 2 * p - k) // s + 1
    Wo = (W + 2 * p - k) // s + 1
    ops = []
    for i in range(k):
        for j in range(k):
            ops.append(xp[:, i:i + (Ho - 1) * s + 1:s,
                          j:j + (Wo - 1) * s + 1:s, :].reshape(B * Ho * Wo, C))
    out = pallas_max_tree(ops)
    return out.reshape(B, Ho, Wo, C)


# --------------------------------------------- separable resize / pool matrices
def bilinear_matrix(n_in, n_out):
    # align_corners=True, matching nn.Upsample(..., align_corners=True) in the spec.
    Wm = np.zeros((n_out, n_in), np.float32)
    if n_in == 1 or n_out == 1:
        Wm[:, 0] = 1.0
    else:
        for i in range(n_out):
            src = i * (n_in - 1) / (n_out - 1)
            lo = int(np.floor(src))
            hi = min(lo + 1, n_in - 1)
            frac = src - lo
            Wm[i, lo] += 1.0 - frac
            Wm[i, hi] += frac
    return jnp.asarray(Wm)


def adaptive_avg_matrix(n_in, n_out):
    P = np.zeros((n_out, n_in), np.float32)
    for i in range(n_out):
        lo = (i * n_in) // n_out
        hi = -((-(i + 1) * n_in) // n_out)  # ceil
        P[i, lo:hi] = 1.0 / (hi - lo)
    return jnp.asarray(P)


def apply_rows_cols(x, Mh, Mw, out_dtype=jnp.bfloat16):
    """x: (B, H, W, C); out[b, i, j, c] = sum_hw Mh[i, h] * Mw[j, w] * x[b, h, w, c]."""
    B, H, W, C = x.shape
    Ho, Wo = Mh.shape[0], Mw.shape[0]
    xt = jnp.transpose(x, (1, 0, 2, 3)).reshape(H, B * W * C)
    y = pallas_matmul(Mh, xt).reshape(Ho, B, W, C)
    yt = jnp.transpose(y, (2, 1, 0, 3)).reshape(W, B * Ho * C)
    z = pallas_matmul(Mw, yt, out_dtype=out_dtype).reshape(Wo, B, Ho, C)
    return jnp.transpose(z, (1, 2, 0, 3))


# ---------------------------------------------------------------- parameter init
_KEY = [jax.random.PRNGKey(0)]


def _next_key():
    _KEY[0], sub = jax.random.split(_KEY[0])
    return sub


def conv_w(o, i, kh, kw):
    fan_in = i * kh * kw
    return jax.random.normal(_next_key(), (o, i, kh, kw), jnp.float32) * (2.0 / fan_in) ** 0.5


def convT_w(i, o, kh, kw):
    fan_in = i * kh * kw
    return jax.random.normal(_next_key(), (i, o, kh, kw), jnp.float32) * (2.0 / fan_in) ** 0.5


def bias_w(c):
    return 0.01 * jax.random.normal(_next_key(), (c,), jnp.float32)


def bn_params(c):
    gamma = 1.0 + 0.1 * jax.random.normal(_next_key(), (c,), jnp.float32)
    beta = 0.1 * jax.random.normal(_next_key(), (c,), jnp.float32)
    mean = 0.1 * jax.random.normal(_next_key(), (c,), jnp.float32)
    var = jnp.abs(jax.random.normal(_next_key(), (c,), jnp.float32)) * 0.1 + 1.0
    return gamma, beta, mean, var


def bn_affine(bn, eps=1e-5):
    gamma, beta, mean, var = bn
    scale = gamma / jnp.sqrt(var + eps)
    shift = beta - mean * scale
    return scale, shift


def fold_bn(w, bn, eps=1e-5):
    scale, shift = bn_affine(bn, eps)
    return w * scale[:, None, None, None], shift


# -------------------------------------------------- ResNet-50 (DeepLab, OS=8)
def make_bottleneck_params(inplanes, planes, downsample):
    p = {
        "conv1": conv_w(planes, inplanes, 1, 1), "bn1": bn_params(planes),
        "conv2": conv_w(planes, planes, 3, 3), "bn2": bn_params(planes),
        "conv3": conv_w(planes * 4, planes, 1, 1), "bn3": bn_params(planes * 4),
    }
    if downsample:
        p["down_w"] = conv_w(planes * 4, inplanes, 1, 1)
        p["down_bn"] = bn_params(planes * 4)
    return p


def make_backbone_params():
    params = {"conv1": conv_w(64, 3, 7, 7), "bn1": bn_params(64)}
    inplanes, dilation = 64, 1
    layers_cfg = [(64, 3, 1, False), (128, 4, 2, False),
                  (256, 6, 2, True), (512, 3, 2, True)]   # deeplabv3: dilate layer3/4
    layers = []
    for planes, blocks, stride, dilate in layers_cfg:
        prev_dilation = dilation
        if dilate:
            dilation *= stride
            stride = 1
        downsample = (stride != 1) or (inplanes != planes * 4)
        layer = [dict(params=make_bottleneck_params(inplanes, planes, downsample),
                      stride=stride, dilation=prev_dilation)]
        inplanes = planes * 4
        for _ in range(1, blocks):
            layer.append(dict(params=make_bottleneck_params(inplanes, planes, False),
                              stride=1, dilation=dilation))
        layers.append(layer)
    params["layers"] = layers
    return params


def bottleneck_forward(x, p, stride, dilation):
    identity = x
    w1, b1 = fold_bn(p["conv1"], p["bn1"])
    out = conv2d(x, w1, bias=b1, relu=True)
    w2, b2 = fold_bn(p["conv2"], p["bn2"])
    out = conv2d(out, w2, bias=b2, relu=True,
                 stride=stride, padding=dilation, dilation=dilation)
    if "down_w" in p:
        wd, bd = fold_bn(p["down_w"], p["down_bn"])
        identity = conv2d(identity, wd, bias=bd, relu=False, stride=stride)
    # conv3 + BN (folded) + residual add + ReLU, all fused into one matmul epilogue.
    w3, b3 = fold_bn(p["conv3"], p["bn3"])
    out = conv2d(out, w3, bias=b3, relu=True, residual=identity)
    return out


# --------------------------------------------------------------------- up head
def make_head_params():
    return {
        "ct1_w": convT_w(2048, 512, 3, 3), "ct1_b": bias_w(512), "bn1": bn_params(512),
        "ct2_w": convT_w(512, 128, 4, 4), "ct2_b": bias_w(128), "bn2": bn_params(128),
        "c3_w": conv_w(32, 128, 3, 3), "c3_b": bias_w(32), "bn3": bn_params(32),
        "c4_w": conv_w(1, 32, 1, 1), "c4_b": bias_w(1),
    }


def head_forward(x, h):
    # Spec order inside nn.Sequential is Conv(Transpose) -> ReLU -> BatchNorm,
    # which matches the matmul epilogue order (bias, ReLU, then BN affine).
    s1, t1 = bn_affine(h["bn1"])
    x = conv_transpose2d(x, h["ct1_w"], h["ct1_b"], stride=2, padding=1,
                         output_padding=1, scale=s1, shift=t1, relu=True)
    s2, t2 = bn_affine(h["bn2"])
    x = conv_transpose2d(x, h["ct2_w"], h["ct2_b"], stride=1, padding=1,
                         output_padding=0, scale=s2, shift=t2, relu=True)
    B, H, W, C = x.shape
    x = apply_rows_cols(x, bilinear_matrix(H, 2 * H), bilinear_matrix(W, 2 * W))
    s3, t3 = bn_affine(h["bn3"])
    x = conv2d(x, h["c3_w"], bias=h["c3_b"], scale=s3, shift=t3, relu=True, padding=1)
    x = conv2d(x, h["c4_w"], bias=h["c4_b"])
    B, H, W, C = x.shape
    x = apply_rows_cols(x, adaptive_avg_matrix(H, 99), adaptive_avg_matrix(W, 99),
                        out_dtype=jnp.float32)
    return x


# --------------------------------------------------------------------- forward
def custom_deeplabv3_forward(x_nchw, backbone, head):
    x = jnp.transpose(x_nchw.astype(jnp.float32), (0, 2, 3, 1))   # NCHW -> NHWC
    w, b = fold_bn(backbone["conv1"], backbone["bn1"])
    x = conv2d(x, w, bias=b, relu=True, stride=2, padding=3)
    x = maxpool3x3_s2(x)
    for layer in backbone["layers"]:
        for blk in layer:
            x = bottleneck_forward(x, blk["params"], blk["stride"], blk["dilation"])
    x = head_forward(x, head)            # (B, 99, 99, 1) f32
    return x[..., 0]                     # squeeze channel dim -> (B, 99, 99)


# ------------------------------------------------------------------------ main
if __name__ == "__main__":
    backbone_params = make_backbone_params()
    head_params = make_head_params()

    x = jax.random.normal(jax.random.PRNGKey(0), (2, 3, 32, 32), jnp.float32)
    out = custom_deeplabv3_forward(x, backbone_params, head_params)
    out = jax.block_until_ready(out)

    assert out.shape == (2, 99, 99), out.shape
    assert bool(jnp.all(jnp.isfinite(out)))
    print("KERNEL_OK")
</pallas_src>

<mosaic_0001>
module attributes {stable_mosaic.version = 11 : i64} {
  func.func @_matmul_kernel(%arg0: i32, %arg1: i32, %arg2: i32, %arg3: memref<256x256xbf16, #tpu.memory_space<vmem>>, %arg4: memref<256x128xbf16, #tpu.memory_space<vmem>>, %arg5: memref<3x128xf32, #tpu.memory_space<vmem>>, %arg6: memref<256x128xbf16, #tpu.memory_space<vmem>>, %arg7: memref<256x128xf32, #tpu.memory_space<vmem>>) attributes {dimension_semantics = [#tpu.dimension_semantics<parallel>, #tpu.dimension_semantics<parallel>, #tpu.dimension_semantics<arbitrary>], iteration_bounds = array<i64: 2, 1, 1>, scalar_prefetch = 0 : i64, scratch_operands = 1 : i64, tpu.core_type = #tpu.core_type<tc>, window_params = [{transform_indices = @transform_0, window_bounds = array<i64: 256, 256>}, {transform_indices = @transform_1, window_bounds = array<i64: 256, 128>}, {transform_indices = @transform_2, window_bounds = array<i64: 3, 128>}, {transform_indices = @transform_3, window_bounds = array<i64: 256, 128>}]} {
    %c0_i32 = arith.constant 0 : i32
    %0 = arith.cmpi eq, %arg2, %c0_i32 : i32
    %1 = arith.extui %0 : i1 to i32
    %c0_i32_0 = arith.constant 0 : i32
    %2 = arith.cmpi ne, %1, %c0_i32_0 : i32
    scf.if %2 {
      %cst_10 = arith.constant 0.000000e+00 : f32
      %12 = vector.broadcast %cst_10 : f32 to vector<256x128xf32>
      %c0_11 = arith.constant 0 : index
      %c0_12 = arith.constant 0 : index
      %13 = vector.load %arg7[%c0_11, %c0_12] : memref<256x128xf32, #tpu.memory_space<vmem>>, vector<256x128xf32>
      tpu.vector_store %arg7[%c0_11, %c0_12], %12 {strides = array<i32>} : memref<256x128xf32, #tpu.memory_space<vmem>>, vector<256x128xf32>,
    } else {
    }
    %c0 = arith.constant 0 : index
    %c0_1 = arith.constant 0 : index
    %3 = vector.load %arg7[%c0, %c0_1] : memref<256x128xf32, #tpu.memory_space<vmem>>, vector<256x128xf32>
    %c0_2 = arith.constant 0 : index
    %c0_3 = arith.constant 0 : index
    %4 = vector.load %arg3[%c0_2, %c0_3] : memref<256x256xbf16, #tpu.memory_space<vmem>>, vector<256x256xbf16>
    %c0_4 = arith.constant 0 : index
    %c0_5 = arith.constant 0 : index
    %5 = vector.load %arg4[%c0_4, %c0_5] : memref<256x128xbf16, #tpu.memory_space<vmem>>, vector<256x128xbf16>
    %cst = arith.constant dense<0.000000e+00> : vector<256x128xf32>
    %6 = tpu.matmul %4, %5, %cst {dimension_numbers = #tpu.dot_dimension_numbers<[1], [0], [0], [1], [0, 0, 1, 1], [], []>} : vector<256x256xbf16>, vector<256x128xbf16>, vector<256x128xf32> -> vector<256x128xf32>
    %7 = arith.addf %3, %6 : vector<256x128xf32>
    %c0_6 = arith.constant 0 : index
    %c0_7 = arith.constant 0 : index
    %8 = vector.load %arg7[%c0_6, %c0_7] : memref<256x128xf32, #tpu.memory_space<vmem>>, vector<256x128xf32>
    tpu.vector_store %arg7[%c0_6, %c0_7], %7 {strides = array<i32>} : memref<256x128xf32, #tpu.memory_space<vmem>>, vector<256x128xf32>,
    %c0_i32_8 = arith.constant 0 : i32
    %9 = arith.cmpi eq, %arg2, %c0_i32_8 : i32
    %10 = arith.extui %9 : i1 to i32
    %c0_i32_9 = arith.constant 0 : i32
    %11 = arith.cmpi ne, %10, %c0_i32_9 : i32
    scf.if %11 {
      %c0_10 = arith.constant 0 : index
      %c0_11 = arith.constant 0 : index
      %12 = vector.load %arg7[%c0_10, %c0_11] : memref<256x128xf32, #tpu.memory_space<vmem>>, vector<256x128xf32>
      %c0_12 = arith.constant 0 : index
      %c0_13 = arith.constant 0 : index
      %13 = vector.load %arg5[%c0_12, %c0_13] : memref<3x128xf32, #tpu.memory_space<vmem>>, vector<1x128xf32>
      %14 = vector.broadcast %13 : vector<1x128xf32> to vector<256x128xf32>
      %15 = arith.addf %12, %14 : vector<256x128xf32>
      %cst_14 = arith.constant 0.000000e+00 : f32
      %16 = vector.broadcast %cst_14 : f32 to vector<256x128xf32>
      %17 = arith.maximumf %15, %16 : vector<256x128xf32>
      %18 = arith.truncf %17 : vector<256x128xf32> to vector<256x128xbf16>
      %c0_15 = arith.constant 0 : index
      %c0_16 = arith.constant 0 : index
      %19 = vector.load %arg6[%c0_15, %c0_16] : memref<256x128xbf16, #tpu.memory_space<vmem>>, vector<256x128xbf16>
      tpu.vector_store %arg6[%c0_15, %c0_16], %18 {strides = array<i32>} : memref<256x128xbf16, #tpu.memory_space<vmem>>, vector<256x128xbf16>,
    } else {
    }
    return
  }
  func.func @transform_0(%arg0: i32, %arg1: i32, %arg2: i32) -> (i32, i32) {
    %c0_i32 = arith.constant 0 : i32
    return %arg0, %arg2 : i32, i32
  }
  func.func @transform_1(%arg0: i32, %arg1: i32, %arg2: i32) -> (i32, i32) {
    %c0_i32 = arith.constant 0 : i32
    return %arg2, %arg1 : i32, i32
  }
  func.func @transform_2(%arg0: i32, %arg1: i32, %arg2: i32) -> (i32, i32) {
    %c0_i32 = arith.constant 0 : i32
    %c0_i32_0 = arith.constant 0 : i32
    return %c0_i32, %arg1 : i32, i32
  }
  func.func @transform_3(%arg0: i32, %arg1: i32, %arg2: i32) -> (i32, i32) {
    %c0_i32 = arith.constant 0 : i32
    return %arg0, %arg1 : i32, i32
  }
}

</mosaic_0001>

<bundles_post_ra>
// kernel: tpu_custom_call.1
= control target key start
LH: loop header
LB: loop body
LE: loop exit
PB: predicated region body
PF: predicated region fallthrough
CT: control target
= control target key end

     0   :  { %8 = vsyncpa [#allocation4], 0  ;;  %s2259_s0 = inlined_call_operand.hbm [shape: bf16[512,256], index: 0, kind: input, shape index: {}]   ;;  %s2260_s1 = inlined_call_operand.hbm [shape: bf16[256,128], index: 1, kind: input, shape index: {}]   ;;  %s2261_s2 = inlined_call_operand.vmem [shape: f32[3,128], index: 2, kind: input, shape index: {}]   ;;  %s2262_s3 = inlined_call_operand.hbm [shape: bf16[512,128], index: 3, kind: output, shape index: {}]  }
   0x1   :  { %10 = vsyncpa [#allocation4 + $0x1], 0 }
   0x2   :  { %11 = vsyncpa [#allocation7], 0 }
   0x3   :  { %12 = vsyncpa [#allocation5], 0 }
   0x4   :  { %14 = vsyncpa [#allocation5 + $0x1], 0  ;;  %s1949_s12 = smov 0   ;;  %s1951_s13 = smov 0  }
   0x5   :  { %s1953_s14 = smov 0   ;;  %s1955_s15 = smov 0  }
   0x6   :  { %s1957_s16 = smov 0   ;;  %s1959_s17 = smov 0  }
   0x7 LB: > { %s1273_s18 = sadd.s32 4294967295, %s1918_s17   ;;  %s1274_s19 = sadd.s32 4294967294, %s1918_s17   ;;  %s1918_s17 = sphi %s1959_s17, %s20_s17   ;;  %s1914_s16 = sphi %s1957_s16, %s2286_s16   ;;  %s1910_s15 = sphi %s1955_s15, %s2285_s15   ;;  %s1906_s14 = sphi %s1953_s14, %s2284_s14   ;;  %s1902_s13 = sphi %s1951_s13, %s2283_s13   ;;  %s1898_s12 = sphi %s1949_s12, %s2282_s12  }
   0x8   : > { %p61_p0 = scmp.ne.s32.totalorder %s1902_s13, %s1898_s12  ;;  %p1983_p1 = scmp.eq.s32.totalorder %s1273_s18, 0 }
   0x9   : > { %p1987_p2 = scmp.eq.s32.totalorder %s1273_s18, 1  ;;  %p147_p3 = scmp.eq.s32.totalorder %s1274_s19, 1 }
   0xa   : > { %s2267_s20 = scalar_select %p1983_p1, 1, 0 }
   0xb   : > { %s2268_s21 = scalar_select %p1987_p2, 1, 0 }
   0xc   : > { %p1993_p4 = por %p1983_p1, %p61_p0  ;;  %p1275_p5 = scmp.ge.s32.totalorder %s1918_s17, 1 }
   0xd   : > { %p1998_p6 = por %p147_p3, %p61_p0  ;;  %p154_p7 = scmp.lt.s32.totalorder %s1918_s17, 3 }
   0xe   : > { %s2269_s22 = scalar_select %p1993_p4, 1, 0 }
   0xf   : > { %s2270_s23 = scalar_select %p1998_p6, 1, 0 }
  0x10   : > { %p2003_p8 = pnand %p1275_p5, %p154_p7  ;;  %s1920_s25 = smov [#allocation6]  }
  0x11   : > { %s170_s26 = sshll.u32 %s1920_s25, 4  ;;  %s39_s28 = sadd.s32 1, %s1914_s16  ;;  %s171_s26 = int_to_ptr.vmem [resolvable:$true] %s170_s26 }
  0x12   : > { %s2271_s24 = scalar_select %p2003_p8, 1, 0 }
  0x13   : > { %p1639_p9 = pneg %p2003_p8  ;;  %s1774_s4 = scalar_lea.hbm %s2260_s1, 2048 }
  0x14   : > { %p1775_p12 = scmp.ne.s32.totalorder %s2260_s1, %s1774_s4  ;;  %p1781_p5 = scmp.lt.u32.totalorder %s1774_s4, %s2260_s1 }
  0x15   : > { %p2012_p11 = pnand %p1639_p9, %p1983_p1 }
  0x17   : > { %p1776_p13 = pneg %p2012_p11 }
  0x19   : > { %p1777_p0 = pnand %p1776_p13, %p1775_p12 }
  0x1b   : > { %p1778_p3 = pneg %p1777_p0 }
  0x1d   : > { %p1783_p7 = pnand %p1781_p5, %p1778_p3 }
  0x1f   : > { %1786 = shalt.err (!%p1783_p7)
}
  0x20   : > { %s1787_s9 = scalar_lea.vmem %s171_s26, 2048  ;;  %p1795_p1 = scmp.lt.s32.totalorder %s171_s26, %s171_s26 }
  0x21   : > { %p1788_p9 = scmp.ne.s32.totalorder %s171_s26, %s1787_s9  ;;  %p1796_p4 = scmp.lt.s32.totalorder %s1787_s9, %s1787_s9 }
  0x23   : > { %p1790_p10 = pnand %p1788_p9, %p1776_p13  ;;  %p1797_p8 = por %p1796_p4, %p1795_p1 }
  0x25   : > { %p1791_p6 = pneg %p1790_p10 }
  0x27   : > { %p1798_p2 = pnand %p1797_p8, %p1791_p6 }
  0x29   : > { %1801 = shalt.err (!%p1798_p2)
}
  0x2a   : > { %s1921_s10 = smov 64   ;;  %s1922_s11 = smov 4  }
  0x2b   : > { %1642 = dma.hbm_to_vmem [thread:$0]  (!%p2012_p11), %s2260_s1, 2048, %s171_s26, [#allocation7], %s1921_s10, %s1921_s10, %s1922_s11  }
  0x2c   : > { %p41_p1 = scmp.ge.s32.totalorder %s39_s28, 2  ;;  %s48_s25 = sadd.s32 1, %s1906_s14 }
  0x2d   : > { %p55_p2 = scmp.ne.s32.totalorder %s1906_s14, %s1902_s13  ;;  %p56_p4 = scmp.eq.s32.totalorder %s1918_s17, 0 }
  0x2e   : > { %s2288_s28 = smov (%p41_p1, %s39_s28), 0  ;;  %p2274_p8 = scmp.ne.s32.totalorder %s2268_s21, 0 }
  0x2f   : > { %p2039_p6 = por %p56_p4, %p55_p2  ;;  %s43_s27 = ssub.s32 %s1914_s16, %s2288_s28 }
  0x30   : > { %p2045_p10 = por %p2274_p8, %p55_p2  ;;  %p1652_p12 = scmp.lt.s32.totalorder %s1918_s17, 2 }
  0x31   : > { %p46_p11 = scmp.eq.s32.totalorder %s43_s27, 0  ;;  %s191_s26 = sand.u32 1, %s1906_s14  }
  0x32   : > { %s1279_s4 = sshll.u32 %s191_s26, 8  ;;  %s1374_s6 = sshll.u32 %s1914_s16, 12 }
  0x33   : > { %s2054_s5 = scalar_select %p46_p11, %s1906_s14, %s48_s25  }
  0x34   : > { %s2060_s9 = scalar_lea.hbm %s2259_s0, %s1374_s6  ;;  %s195_s21 = scalar_lea.vmem [#allocation3], %s1279_s4 }
  0x35   : > { %s205_s10 = sshll.u32 %s195_s21, 4  ;;  %p2066_p13 = pnand %p1652_p12, %p2039_p6  ;;  %s2062_s10 = int_to_ptr.vmem [resolvable:$true] %s205_s10 }
  0x36   : > { %s2070_s18 = scalar_lea.sflag [#allocation4], %s191_s26  ;;  %s1802_s19 = scalar_lea.hbm %s2060_s9, 4096 }
  0x37   : > { %p1803_p0 = scmp.ne.s32.totalorder %s2060_s9, %s1802_s19  ;;  %p1804_p3 = pneg %p2066_p13 }
  0x38   : > { %s1807_s29 = scalar_lea.hbm %s2259_s0, 8192  ;;  %p1808_p9 = scmp.lt.u32.totalorder %s2060_s9, %s2259_s0 }
  0x39   : > { %p1805_p5 = pnand %p1804_p3, %p1803_p0  ;;  %p1809_p1 = scmp.lt.u32.totalorder %s1807_s29, %s1802_s19 }
  0x3a   : > { %p1811_p4 = scmp.lt.u32.totalorder %s1802_s19, %s2060_s9 }
  0x3b   : > { %p1806_p7 = pneg %p1805_p5  ;;  %p1810_p2 = por %p1809_p1, %p1808_p9 }
  0x3d   : > { %p1812_p6 = por %p1811_p4, %p1810_p2 }
  0x3f   : > { %p1813_p8 = pnand %p1812_p6, %p1806_p7 }
  0x41   : > { %1816 = shalt.err (!%p1813_p8)
}
  0x42   : > { %s1817_s26 = scalar_lea.vmem %s2062_s10, 4096  ;;  %s1923_s7 = smov [#allocation3]  }
  0x43   : > { %p1818_p12 = scmp.ne.s32.totalorder %s2062_s10, %s1817_s26  ;;  %s1822_s8 = sshll.u32 %s1923_s7, 4  ;;  %s1823_s8 = int_to_ptr.vmem [resolvable:$false] %s1822_s8 }
  0x44   : > { %s1824_s21 = scalar_lea.vmem %s1823_s8, 8192  ;;  %p1825_p5 = scmp.lt.s32.totalorder %s2062_s10, %s1823_s8 }
  0x45   : > { %p1820_p11 = pnand %p1818_p12, %p1804_p3  ;;  %p1826_p9 = scmp.lt.s32.totalorder %s1824_s21, %s1817_s26 }
  0x47   : > { %p1821_p0 = pneg %p1820_p11  ;;  %p1827_p1 = por %p1826_p9, %p1825_p5 }
  0x49   : > { %p1828_p2 = pnand %p1827_p1, %p1821_p0 }
  0x4b   : > { %1831 = shalt.err (!%p1828_p2)
}
  0x4c   : > { %s1924_s19 = smov 128   ;;  %s1925_s25 = smov 8  }
  0x4d   : > { %1646 = dma.hbm_to_vmem [thread:$0]  (!%p2066_p13), %s2060_s9, 4096, %s2062_s10, %s2070_s18, %s1924_s19, %s1924_s19, %s1925_s25  }
  0x4e   : > { %p2277_p3 = scmp.ne.s32.totalorder %s2271_s24, 0 }
  0x4f   : > { %s2101_s27 = sand.u32 (!%p2277_p3), 1, %s1902_s13   ;;  %p2278_p7 = scmp.ne.s32.totalorder (!%p2277_p3), %s2269_s22, 0 }
  0x50   : > { %217 = sbr.rel (%p2277_p3) target bundleno = 419 (0x1a3), region = 32  ;;  %s1284_s29 = sshll.u32 (!%p2277_p3), %s2101_s27, 8 }
  0x51   : > { %s220_s4 = scalar_lea.sflag (!%p2277_p3), [#allocation4], %s2101_s27  ;;  %s2105_s6 = scalar_lea.vmem (!%p2277_p3), [#allocation3], %s1284_s29 }
  0x57   : > { %1885 = dma.done.wait (%p2278_p7), %s220_s4, 4096  }
  0x58   : > { %1887 = vsyncadd (%p2278_p7), %s220_s4, 4294963200  ;;  %p2279_p13 = scmp.ne.s32.totalorder %s2267_s20, 0 }
  0x5a   : > { %1889 = dma.done.wait (%p2279_p13), [#allocation7], 2048  }
  0x5b   : > { %1891 = vsyncadd (%p2279_p13), [#allocation7], 4294965248  ;;  %v1710_v0 = vld [vmem:[#allocation6 + $0x40] sm:$0xff]   ;;  %v1712_v2 = vld [vmem:[#allocation6 + $0x48] sm:$0xff]   ;;  %s1286_s24 = sshll.u32 %s2101_s27, 7  ;;  %s1407_s10 = sshll.u32 %s1910_s15, 11 }
  0x5c   : > { %v1711_v1 = vld [vmem:[#allocation6] sm:$0xff]   ;;  %1503 = vmatprep.subr.bf16.mxu0 %v1710_v0  ;;  %1615 = vmatprep.subr.bf16.mxu1 %v1710_v0  ;;  %v1713_v3 = vld [vmem:[#allocation6 + $0x8] sm:$0xff]   ;;  %v1714_v4 = vld [vmem:[#allocation6 + $0x50] sm:$0xff]   ;;  %s2157_s9 = scalar_lea.vmem [#allocation8], %s1286_s24  ;;  %s2206_s7 = scalar_lea.hbm %s2262_s3, %s1407_s10 }
  0x5d   : > { %1504 = vmatpush3.bf16.msra.mxu0 %v1711_v1  ;;  %1623 = vmatpush3.bf16.msra.mxu1 %v1711_v1  ;;  %v1715_v5 = vld [vmem:[#allocation6 + $0x10] sm:$0xff]   ;;  %v1716_v6 = vld [vmem:[#allocation6 + $0x58] sm:$0xff]   ;;  %v1718_v8 = vld [vmem:[#allocation6 + $0x60] sm:$0xff]   ;;  %s1155_s11 = sshll.u32 %s2157_s9, 4  ;;  %s1141_s15 = scalar_lea.sflag [#allocation5], %s2101_s27  ;;  %s2208_s11 = int_to_ptr.vmem [resolvable:$true] %s1155_s11 }
  0x5e   : > { %1505 = vmatprep.subr.bf16.mxu0 %v1712_v2  ;;  %1616 = vmatprep.subr.bf16.mxu1 %v1712_v2  ;;  %v1717_v7 = vld [vmem:[#allocation6 + $0x18] sm:$0xff]   ;;  %v1719_v9 = vld [vmem:[#allocation6 + $0x20] sm:$0xff]   ;;  %v1720_v10 = vld [vmem:[#allocation6 + $0x68] sm:$0xff]   ;;  %s1832_s8 = scalar_lea.vmem %s2208_s11, 2048  ;;  %s1926_s21 = smov [#allocation8]  }
  0x5f   : > { %v1728_v11 = vld [vmem:[%s2105_s6 + $0x4] ss:$8 sps:$4 sm:$0xff]   ;;  %v1722_v14 = vld [vmem:[#allocation6 + $0x70] sm:$0xff]   ;;  %v1724_v16 = vld [vmem:[#allocation6 + $0x78] sm:$0xff]   ;;  %p1833_p4 = scmp.ne.s32.totalorder %s2208_s11, %s1832_s8  ;;  %s1836_s19 = sshll.u32 %s1926_s21, 4  ;;  %s1837_s19 = int_to_ptr.vmem [resolvable:$false] %s1836_s19 }
  0x60   : > { %v1731_v12 = vld [vmem:[%s2105_s6 + $0x84] ss:$8 sps:$4 sm:$0xff]   ;;  %683 = vmatprep.mubr.bf16.mxu0 %v1728_v11  ;;  %v1723_v15 = vld [vmem:[#allocation6 + $0x30] sm:$0xff]   ;;  %v1725_v17 = vld [vmem:[#allocation6 + $0x38] sm:$0xff]   ;;  %s1838_s25 = scalar_lea.vmem %s1837_s19, 4096  ;;  %p1839_p12 = scmp.lt.s32.totalorder %s2208_s11, %s1837_s19 }
  0x61   : > { %1506 = vmatpush3.bf16.msra.mxu0 %v1713_v3  ;;  %1624 = vmatpush3.bf16.msra.mxu1 %v1713_v3  ;;  %v1721_v13 = vld [vmem:[#allocation6 + $0x28] sm:$0xff]   ;;  %v1732_v20 = vld [vmem:[%s2105_s6 + $0x14] ss:$8 sps:$4 sm:$0xff]   ;;  %v1736_v22 = vld [vmem:[%s2105_s6 + $0x10] ss:$8 sps:$4 sm:$0xff]   ;;  %p1834_p6 = pnand %p1833_p4, %p2045_p10  ;;  %p1840_p11 = scmp.lt.s32.totalorder %s1838_s25, %s1832_s8 }
  0x62   : > { %1507 = vmatprep.subr.bf16.mxu0 %v1714_v4  ;;  %1617 = vmatprep.subr.bf16.mxu1 %v1714_v4  ;;  %v1726_v18 = vld [vmem:[%s2105_s6] ss:$8 sps:$4 sm:$0xff]   ;;  %v1734_v21 = vld [vmem:[%s2105_s6 + $0x94] ss:$8 sps:$4 sm:$0xff]   ;;  %v1737_v23 = vld [vmem:[%s2105_s6 + $0x90] ss:$8 sps:$4 sm:$0xff]  }
  0x63   : > { %747 = vmatprep.mubr.bf16.mxu1 %v1731_v12  ;;  %v1729_v19 = vld [vmem:[%s2105_s6 + $0x80] ss:$8 sps:$4 sm:$0xff]   ;;  %v1738_v24 = vld [vmem:[%s2105_s6 + $0x24] ss:$8 sps:$4 sm:$0xff]   ;;  %v1744_v28 = vld [vmem:[%s2105_s6 + $0x34] ss:$8 sps:$4 sm:$0xff]   ;;  %p1835_p8 = pneg %p1834_p6  ;;  %p1841_p0 = por %p1840_p11, %p1839_p12 }
  0x64   : > { %v1740_v25 = vld [vmem:[%s2105_s6 + $0xa4] ss:$8 sps:$4 sm:$0xff]   ;;  %v1742_v26 = vld [vmem:[%s2105_s6 + $0x20] ss:$8 sps:$4 sm:$0xff]   ;;  %v1746_v29 = vld [vmem:[%s2105_s6 + $0xb4] ss:$8 sps:$4 sm:$0xff]  }
  0x65   : > { %1508 = vmatpush3.bf16.msra.mxu0 %v1715_v5  ;;  %1625 = vmatpush3.bf16.msra.mxu1 %v1715_v5  ;;  %v1743_v27 = vld [vmem:[%s2105_s6 + $0xa0] ss:$8 sps:$4 sm:$0xff]   ;;  %v1748_v30 = vld [vmem:[%s2105_s6 + $0x30] ss:$8 sps:$4 sm:$0xff]   ;;  %v1750_v32 = vld [vmem:[%s2105_s6 + $0x44] ss:$8 sps:$4 sm:$0xff]   ;;  %p1842_p5 = pnand %p1841_p0, %p1835_p8 }
  0x66   : > { %1509 = vmatprep.subr.bf16.mxu0 %v1716_v6  ;;  %1618 = vmatprep.subr.bf16.mxu1 %v1716_v6  ;;  %v1749_v31 = vld [vmem:[%s2105_s6 + $0xb0] ss:$8 sps:$4 sm:$0xff]   ;;  %v1752_v33 = vld [vmem:[%s2105_s6 + $0xc4] ss:$8 sps:$4 sm:$0xff]   ;;  %v1754_v34 = vld [vmem:[%s2105_s6 + $0x40] ss:$8 sps:$4 sm:$0xff]  }
  0x67   : > { %v1755_v35 = vld [vmem:[%s2105_s6 + $0xc0] ss:$8 sps:$4 sm:$0xff]   ;;  %v1756_v36 = vld [vmem:[%s2105_s6 + $0x54] ss:$8 sps:$4 sm:$0xff]   ;;  %v1760_v38 = vld [vmem:[%s2105_s6 + $0x50] ss:$8 sps:$4 sm:$0xff]  }
  0x68   : > { %v1758_v37 = vld [vmem:[%s2105_s6 + $0xd4] ss:$8 sps:$4 sm:$0xff]   ;;  %v1761_v39 = vld [vmem:[%s2105_s6 + $0xd0] ss:$8 sps:$4 sm:$0xff]   ;;  %v1762_v40 = vld [vmem:[%s2105_s6 + $0x64] ss:$8 sps:$4 sm:$0xff]  }
  0x69   : > { %1510 = vmatpush3.bf16.msra.mxu0 %v1717_v7  ;;  %1626 = vmatpush3.bf16.msra.mxu1 %v1717_v7  ;;  %v1764_v41 = vld [vmem:[%s2105_s6 + $0xe4] ss:$8 sps:$4 sm:$0xff]   ;;  %v1766_v42 = vld [vmem:[%s2105_s6 + $0x60] ss:$8 sps:$4 sm:$0xff]   ;;  %v1768_v44 = vld [vmem:[%s2105_s6 + $0x74] ss:$8 sps:$4 sm:$0xff]  }
  0x6a   : > { %1511 = vmatprep.subr.bf16.mxu0 %v1718_v8  ;;  %1619 = vmatprep.subr.bf16.mxu1 %v1718_v8  ;;  %v1767_v43 = vld [vmem:[%s2105_s6 + $0xe0] ss:$8 sps:$4 sm:$0xff]   ;;  %v1770_v45 = vld [vmem:[%s2105_s6 + $0xf4] ss:$8 sps:$4 sm:$0xff]   ;;  %v1772_v46 = vld [vmem:[%s2105_s6 + $0x70] ss:$8 sps:$4 sm:$0xff]  }
  0x6b   : > { %v1773_v47 = vld [vmem:[%s2105_s6 + $0xf0] ss:$8 sps:$4 sm:$0xff]   ;;  %v2150_v51 = vld [vmem:[%s2261_s2] ss:$0 sm:$0xff] }
  0x6d   : > { %1512 = vmatpush3.bf16.msra.mxu0 %v1719_v9  ;;  %1627 = vmatpush3.bf16.msra.mxu1 %v1719_v9 }
  0x6e   : > { %1513 = vmatprep.subr.bf16.mxu0 %v1720_v10  ;;  %1620 = vmatprep.subr.bf16.mxu1 %v1720_v10 }
  0x71   : > { %1514 = vmatpush3.bf16.msra.mxu0 %v1721_v13  ;;  %1628 = vmatpush3.bf16.msra.mxu1 %v1721_v13 }
  0x72   : > { %1515 = vmatprep.subr.bf16.mxu0 %v1722_v14  ;;  %1621 = vmatprep.subr.bf16.mxu1 %v1722_v14 }
  0x75   : > { %1516 = vmatpush3.bf16.msra.mxu0 %v1723_v15  ;;  %1629 = vmatpush3.bf16.msra.mxu1 %v1723_v15 }
  0x76   : > { %1517 = vmatprep.subr.bf16.mxu0 %v1724_v16  ;;  %1622 = vmatprep.subr.bf16.mxu1 %v1724_v16 }
  0x79   : > { %1518 = vmatpush3.bf16.msra.mxu0 %v1725_v17  ;;  %1630 = vmatpush3.bf16.msra.mxu1 %v1725_v17 }
  0x7c   : > { %684 = vmatmul.mubr.bf16.vlgmr.msra.gmra.mrb[0].mxu0 %v1726_v18  ;;  %748 = vmatmul.mubr.bf16.vlgmr.msra.gmra.mrb[0].mxu1 %v1729_v19 }
  0x7d   : > { %691 = vmatprep.mubr.bf16.mxu0 %v1732_v20  ;;  %755 = vmatprep.mubr.bf16.mxu1 %v1734_v21 }
  0x84   : > { %692 = vmatmul.mubr.bf16.gmra.mrb[4].mxu0 %v1736_v22  ;;  %756 = vmatmul.mubr.bf16.gmra.mrb[4].mxu1 %v1737_v23 }
  0x85   : > { %699 = vmatprep.mubr.bf16.mxu0 %v1738_v24  ;;  %763 = vmatprep.mubr.bf16.mxu1 %v1740_v25 }
  0x8c   : > { %700 = vmatmul.mubr.bf16.gmra.mrb[8].mxu0 %v1742_v26  ;;  %764 = vmatmul.mubr.bf16.gmra.mrb[8].mxu1 %v1743_v27 }
  0x8d   : > { %707 = vmatprep.mubr.bf16.mxu0 %v1744_v28  ;;  %771 = vmatprep.mubr.bf16.mxu1 %v1746_v29 }
  0x94   : > { %708 = vmatmul.mubr.bf16.gmra.mrb[12].mxu0 %v1748_v30  ;;  %772 = vmatmul.mubr.bf16.gmra.mrb[12].mxu1 %v1749_v31 }
  0x95   : > { %715 = vmatprep.mubr.bf16.mxu0 %v1750_v32  ;;  %779 = vmatprep.mubr.bf16.mxu1 %v1752_v33 }
  0x9c   : > { %716 = vmatmul.mubr.bf16.gmra.mrb[16].mxu0 %v1754_v34  ;;  %780 = vmatmul.mubr.bf16.gmra.mrb[16].mxu1 %v1755_v35 }
  0x9d   : > { %723 = vmatprep.mubr.bf16.mxu0 %v1756_v36  ;;  %787 = vmatprep.mubr.bf16.mxu1 %v1758_v37 }
  0xa4   : > { %724 = vmatmul.mubr.bf16.gmra.mrb[20].mxu0 %v1760_v38  ;;  %788 = vmatmul.mubr.bf16.gmra.mrb[20].mxu1 %v1761_v39 }
  0xa5   : > { %731 = vmatprep.mubr.bf16.mxu0 %v1762_v40  ;;  %795 = vmatprep.mubr.bf16.mxu1 %v1764_v41 }
  0xac   : > { %732 = vmatmul.mubr.bf16.gmra.mrb[24].mxu0 %v1766_v42  ;;  %796 = vmatmul.mubr.bf16.gmra.mrb[24].mxu1 %v1767_v43 }
  0xad   : > { %739 = vmatprep.mubr.bf16.mxu0 %v1768_v44  ;;  %803 = vmatprep.mubr.bf16.mxu1 %v1770_v45 }
  0xb4   : > { %740 = vmatmul.mubr.bf16.gmra.mrb[28].mxu0 %v1772_v46  ;;  %804 = vmatmul.mubr.bf16.gmra.mrb[28].mxu1 %v1773_v47 }
 0x14f   : > { %v1519_v48 = vpop.f32.mrb[0].mxu0  ;;  %v1567_v49 = vpop.f32.mrb[0].mxu1 }
 0x150   : > { %v1520_v50 = vpop.f32.mrb[1].mxu0  ;;  %v1568_v52 = vpop.f32.mrb[1].mxu1 }
 0x151   : > { %v1521_v53 = vadd.f32 %v1520_v50, %v1519_v48  ;;  %v1569_v54 = vadd.f32 %v1568_v52, %v1567_v49  ;;  %v1522_v55 = vpop.f32.mrb[2].mxu0  ;;  %v1570_v56 = vpop.f32.mrb[2].mxu1 }
 0x152   : > { %v1523_v57 = vpop.f32.mrb[3].mxu0  ;;  %v1571_v58 = vpop.f32.mrb[3].mxu1 }
 0x153   : > { %v916_v59 = vadd.f32 %v1521_v53, %v2150_v51  ;;  %v932_v60 = vadd.f32 %v1569_v54, %v2150_v51  ;;  %v1524_v61 = vadd.f32 %v1523_v57, %v1522_v55  ;;  %v1572_v62 = vadd.f32 %v1571_v58, %v1570_v56 }
 0x155   : > { %v917_v63 = vadd.f32 %v1524_v61, %v2150_v51  ;;  %v933_v0 = vadd.f32 %v1572_v62, %v2150_v51  ;;  %v948_v1 = vmax.f32 %v916_v59, 0.0  ;;  %v964_v2 = vmax.f32 %v932_v60, 0.0 }
 0x157   : > { %v949_v3 = vmax.f32 %v917_v63, 0.0  ;;  %v965_v4 = vmax.f32 %v933_v0, 0.0  ;;  %v1525_v5 = vpop.f32.mrb[4].mxu0  ;;  %v1573_v6 = vpop.f32.mrb[4].mxu1 }
 0x158   : > { %v1526_v7 = vpop.f32.mrb[5].mxu0  ;;  %v1574_v8 = vpop.f32.mrb[5].mxu1 }
 0x159   : > { %v1411_v9 = vpack.c.bf16 %v949_v3, %v948_v1  ;;  %v1451_v10 = vpack.c.bf16 %v965_v4, %v964_v2  ;;  %v1527_v11 = vadd.f32 %v1526_v7, %v1525_v5  ;;  %v1575_v12 = vadd.f32 %v1574_v8, %v1573_v6  ;;  %v1528_v13 = vpop.f32.mrb[6].mxu0  ;;  %v1576_v14 = vpop.f32.mrb[6].mxu1 }
 0x15a   : > { %v1529_v15 = vpop.f32.mrb[7].mxu0  ;;  %v1577_v16 = vpop.f32.mrb[7].mxu1 }
 0x15b   : > { %1412 = vst [vmem:[%s2157_s9] sm:$0xff] %v1411_v9   ;;  %1495 = vst [vmem:[%s2157_s9 + $0x40] sm:$0xff] %v1451_v10   ;;  %v918_v17 = vadd.f32 %v1527_v11, %v2150_v51  ;;  %v934_v18 = vadd.f32 %v1575_v12, %v2150_v51  ;;  %v1530_v19 = vadd.f32 %v1529_v15, %v1528_v13 }
 0x15c   : > { %v1578_v20 = vadd.f32 %v1577_v16, %v1576_v14 }
 0x15d   : > { %v919_v21 = vadd.f32 %v1530_v19, %v2150_v51  ;;  %v950_v23 = vmax.f32 %v918_v17, 0.0  ;;  %v966_v24 = vmax.f32 %v934_v18, 0.0 }
 0x15e   : > { %v935_v22 = vadd.f32 %v1578_v20, %v2150_v51 }
 0x15f   : > { %v951_v25 = vmax.f32 %v919_v21, 0.0  ;;  %v1531_v27 = vpop.f32.mrb[8].mxu0  ;;  %v1579_v28 = vpop.f32.mrb[8].mxu1 }
 0x160   : > { %v967_v26 = vmax.f32 %v935_v22, 0.0  ;;  %v1532_v29 = vpop.f32.mrb[9].mxu0  ;;  %v1580_v30 = vpop.f32.mrb[9].mxu1 }
 0x161   : > { %v1416_v31 = vpack.c.bf16 %v951_v25, %v950_v23  ;;  %v1533_v33 = vadd.f32 %v1532_v29, %v1531_v27  ;;  %v1581_v34 = vadd.f32 %v1580_v30, %v1579_v28  ;;  %v1534_v35 = vpop.f32.mrb[10].mxu0  ;;  %v1582_v36 = vpop.f32.mrb[10].mxu1 }
 0x162   : > { %v1456_v32 = vpack.c.bf16 %v967_v26, %v966_v24  ;;  %v1535_v37 = vpop.f32.mrb[11].mxu0  ;;  %v1583_v38 = vpop.f32.mrb[11].mxu1 }
 0x163   : > { %1488 = vst [vmem:[%s2157_s9 + $0x8] sm:$0xff] %v1416_v31   ;;  %v920_v39 = vadd.f32 %v1533_v33, %v2150_v51  ;;  %v936_v40 = vadd.f32 %v1581_v34, %v2150_v51  ;;  %v1536_v41 = vadd.f32 %v1535_v37, %v1534_v35  ;;  %v1584_v42 = vadd.f32 %v1583_v38, %v1582_v36 }
 0x164   : > { %1496 = vst [vmem:[%s2157_s9 + $0x48] sm:$0xff] %v1456_v32  }
 0x165   : > { %v921_v43 = vadd.f32 %v1536_v41, %v2150_v51  ;;  %v937_v44 = vadd.f32 %v1584_v42, %v2150_v51  ;;  %v952_v45 = vmax.f32 %v920_v39, 0.0  ;;  %v968_v46 = vmax.f32 %v936_v40, 0.0 }
 0x167   : > { %v953_v47 = vmax.f32 %v921_v43, 0.0  ;;  %v969_v48 = vmax.f32 %v937_v44, 0.0  ;;  %v1537_v49 = vpop.f32.mrb[12].mxu0  ;;  %v1585_v50 = vpop.f32.mrb[12].mxu1 }
 0x168   : > { %v1538_v52 = vpop.f32.mrb[13].mxu0  ;;  %v1586_v53 = vpop.f32.mrb[13].mxu1 }
 0x169   : > { %v1421_v54 = vpack.c.bf16 %v953_v47, %v952_v45  ;;  %v1461_v55 = vpack.c.bf16 %v969_v48, %v968_v46  ;;  %v1539_v56 = vadd.f32 %v1538_v52, %v1537_v49  ;;  %v1587_v57 = vadd.f32 %v1586_v53, %v1585_v50  ;;  %v1540_v58 = vpop.f32.mrb[14].mxu0  ;;  %v1588_v59 = vpop.f32.mrb[14].mxu1 }
 0x16a   : > { %v1541_v60 = vpop.f32.mrb[15].mxu0  ;;  %v1589_v61 = vpop.f32.mrb[15].mxu1 }
 0x16b   : > { %1489 = vst [vmem:[%s2157_s9 + $0x10] sm:$0xff] %v1421_v54   ;;  %1497 = vst [vmem:[%s2157_s9 + $0x50] sm:$0xff] %v1461_v55   ;;  %v922_v62 = vadd.f32 %v1539_v56, %v2150_v51  ;;  %v938_v63 = vadd.f32 %v1587_v57, %v2150_v51  ;;  %v1542_v0 = vadd.f32 %v1541_v60, %v1540_v58 }
 0x16c   : > { %v1590_v1 = vadd.f32 %v1589_v61, %v1588_v59 }
 0x16d   : > { %v923_v2 = vadd.f32 %v1542_v0, %v2150_v51  ;;  %v954_v4 = vmax.f32 %v922_v62, 0.0  ;;  %v970_v5 = vmax.f32 %v938_v63, 0.0 }
 0x16e   : > { %v939_v3 = vadd.f32 %v1590_v1, %v2150_v51 }
 0x16f   : > { %v955_v6 = vmax.f32 %v923_v2, 0.0  ;;  %v1543_v8 = vpop.f32.mrb[16].mxu0  ;;  %v1591_v9 = vpop.f32.mrb[16].mxu1 }
 0x170   : > { %v971_v7 = vmax.f32 %v939_v3, 0.0  ;;  %v1544_v10 = vpop.f32.mrb[17].mxu0  ;;  %v1592_v11 = vpop.f32.mrb[17].mxu1 }
 0x171   : > { %v1426_v12 = vpack.c.bf16 %v955_v6, %v954_v4  ;;  %v1545_v14 = vadd.f32 %v1544_v10, %v1543_v8  ;;  %v1593_v15 = vadd.f32 %v1592_v11, %v1591_v9  ;;  %v1546_v16 = vpop.f32.mrb[18].mxu0  ;;  %v1594_v17 = vpop.f32.mrb[18].mxu1 }
 0x172   : > { %v1466_v13 = vpack.c.bf16 %v971_v7, %v970_v5  ;;  %v1547_v18 = vpop.f32.mrb[19].mxu0  ;;  %v1595_v19 = vpop.f32.mrb[19].mxu1 }
 0x173   : > { %1490 = vst [vmem:[%s2157_s9 + $0x18] sm:$0xff] %v1426_v12   ;;  %v924_v20 = vadd.f32 %v1545_v14, %v2150_v51  ;;  %v940_v21 = vadd.f32 %v1593_v15, %v2150_v51  ;;  %v1548_v22 = vadd.f32 %v1547_v18, %v1546_v16  ;;  %v1596_v23 = vadd.f32 %v1595_v19, %v1594_v17 }
 0x174   : > { %1498 = vst [vmem:[%s2157_s9 + $0x58] sm:$0xff] %v1466_v13  }
 0x175   : > { %v925_v24 = vadd.f32 %v1548_v22, %v2150_v51  ;;  %v941_v25 = vadd.f32 %v1596_v23, %v2150_v51  ;;  %v956_v26 = vmax.f32 %v924_v20, 0.0  ;;  %v972_v27 = vmax.f32 %v940_v21, 0.0 }
 0x177   : > { %v957_v28 = vmax.f32 %v925_v24, 0.0  ;;  %v973_v29 = vmax.f32 %v941_v25, 0.0  ;;  %v1549_v30 = vpop.f32.mrb[20].mxu0  ;;  %v1597_v31 = vpop.f32.mrb[20].mxu1 }
 0x178   : > { %v1550_v32 = vpop.f32.mrb[21].mxu0  ;;  %v1598_v33 = vpop.f32.mrb[21].mxu1 }
 0x179   : > { %v1431_v34 = vpack.c.bf16 %v957_v28, %v956_v26  ;;  %v1471_v35 = vpack.c.bf16 %v973_v29, %v972_v27  ;;  %v1551_v36 = vadd.f32 %v1550_v32, %v1549_v30  ;;  %v1599_v37 = vadd.f32 %v1598_v33, %v1597_v31  ;;  %v1552_v38 = vpop.f32.mrb[22].mxu0  ;;  %v1600_v39 = vpop.f32.mrb[22].mxu1 }
 0x17a   : > { %v1553_v40 = vpop.f32.mrb[23].mxu0  ;;  %v1601_v41 = vpop.f32.mrb[23].mxu1 }
 0x17b   : > { %1491 = vst [vmem:[%s2157_s9 + $0x20] sm:$0xff] %v1431_v34   ;;  %1499 = vst [vmem:[%s2157_s9 + $0x60] sm:$0xff] %v1471_v35   ;;  %v926_v42 = vadd.f32 %v1551_v36, %v2150_v51  ;;  %v942_v43 = vadd.f32 %v1599_v37, %v2150_v51  ;;  %v1554_v44 = vadd.f32 %v1553_v40, %v1552_v38 }
 0x17c   : > { %v1602_v45 = vadd.f32 %v1601_v41, %v1600_v39 }
 0x17d   : > { %v927_v46 = vadd.f32 %v1554_v44, %v2150_v51  ;;  %v958_v48 = vmax.f32 %v926_v42, 0.0  ;;  %v974_v49 = vmax.f32 %v942_v43, 0.0 }
 0x17e   : > { %v943_v47 = vadd.f32 %v1602_v45, %v2150_v51 }
 0x17f   : > { %v959_v50 = vmax.f32 %v927_v46, 0.0  ;;  %v1555_v53 = vpop.f32.mrb[24].mxu0  ;;  %v1603_v54 = vpop.f32.mrb[24].mxu1 }
 0x180   : > { %v975_v52 = vmax.f32 %v943_v47, 0.0  ;;  %v1556_v55 = vpop.f32.mrb[25].mxu0  ;;  %v1604_v56 = vpop.f32.mrb[25].mxu1 }
 0x181   : > { %v1436_v57 = vpack.c.bf16 %v959_v50, %v958_v48  ;;  %v1557_v59 = vadd.f32 %v1556_v55, %v1555_v53  ;;  %v1605_v60 = vadd.f32 %v1604_v56, %v1603_v54  ;;  %v1558_v61 = vpop.f32.mrb[26].mxu0  ;;  %v1606_v62 = vpop.f32.mrb[26].mxu1 }
 0x182   : > { %v1476_v58 = vpack.c.bf16 %v975_v52, %v974_v49  ;;  %v1559_v63 = vpop.f32.mrb[27].mxu0  ;;  %v1607_v0 = vpop.f32.mrb[27].mxu1 }
 0x183   : > { %1492 = vst [vmem:[%s2157_s9 + $0x28] sm:$0xff] %v1436_v57   ;;  %v928_v1 = vadd.f32 %v1557_v59, %v2150_v51  ;;  %v944_v2 = vadd.f32 %v1605_v60, %v2150_v51  ;;  %v1560_v3 = vadd.f32 %v1559_v63, %v1558_v61  ;;  %v1608_v4 = vadd.f32 %v1607_v0, %v1606_v62 }
 0x184   : > { %1500 = vst [vmem:[%s2157_s9 + $0x68] sm:$0xff] %v1476_v58  }
 0x185   : > { %v929_v5 = vadd.f32 %v1560_v3, %v2150_v51  ;;  %v945_v6 = vadd.f32 %v1608_v4, %v2150_v51  ;;  %v960_v7 = vmax.f32 %v928_v1, 0.0  ;;  %v976_v8 = vmax.f32 %v944_v2, 0.0 }
 0x187   : > { %v961_v9 = vmax.f32 %v929_v5, 0.0  ;;  %v977_v10 = vmax.f32 %v945_v6, 0.0  ;;  %v1561_v11 = vpop.f32.mrb[28].mxu0  ;;  %v1609_v12 = vpop.f32.mrb[28].mxu1 }
 0x188   : > { %v1562_v13 = vpop.f32.mrb[29].mxu0  ;;  %v1610_v14 = vpop.f32.mrb[29].mxu1 }
 0x189   : > { %v1441_v15 = vpack.c.bf16 %v961_v9, %v960_v7  ;;  %v1481_v16 = vpack.c.bf16 %v977_v10, %v976_v8  ;;  %v1563_v17 = vadd.f32 %v1562_v13, %v1561_v11  ;;  %v1611_v18 = vadd.f32 %v1610_v14, %v1609_v12  ;;  %v1564_v19 = vpop.f32.mrb[30].mxu0  ;;  %v1612_v20 = vpop.f32.mrb[30].mxu1 }
 0x18a   : > { %v1565_v21 = vpop.f32.mrb[31].mxu0  ;;  %v1613_v22 = vpop.f32.mrb[31].mxu1 }
 0x18b   : > { %1493 = vst [vmem:[%s2157_s9 + $0x30] sm:$0xff] %v1441_v15   ;;  %1501 = vst [vmem:[%s2157_s9 + $0x70] sm:$0xff] %v1481_v16   ;;  %v930_v23 = vadd.f32 %v1563_v17, %v2150_v51  ;;  %v946_v24 = vadd.f32 %v1611_v18, %v2150_v51  ;;  %v1566_v25 = vadd.f32 %v1565_v21, %v1564_v19 }
 0x18c   : > { %v1614_v26 = vadd.f32 %v1613_v22, %v1612_v20 }
 0x18d   : > { %v931_v27 = vadd.f32 %v1566_v25, %v2150_v51  ;;  %v962_v29 = vmax.f32 %v930_v23, 0.0  ;;  %v978_v30 = vmax.f32 %v946_v24, 0.0 }
 0x18e   : > { %v947_v28 = vadd.f32 %v1614_v26, %v2150_v51 }
 0x18f   : > { %v963_v31 = vmax.f32 %v931_v27, 0.0 }
 0x190   : > { %v979_v32 = vmax.f32 %v947_v28, 0.0 }
 0x191   : > { %v1446_v33 = vpack.c.bf16 %v963_v31, %v962_v29 }
 0x192   : > { %v1486_v34 = vpack.c.bf16 %v979_v32, %v978_v30 }
 0x193   : > { %1494 = vst [vmem:[%s2157_s9 + $0x38] sm:$0xff] %v1446_v33  }
 0x194   : > { %1502 = vst [vmem:[%s2157_s9 + $0x78] sm:$0xff] %v1486_v34  }
 0x195   : > { %1845 = shalt.err (!%p1842_p5)
}
 0x196   : > { %s1846_s29 = scalar_lea.hbm %s2206_s7, 2048  ;;  %s1850_s20 = scalar_lea.hbm %s2262_s3, 4096 }
 0x197   : > { %p1847_p9 = scmp.ne.s32.totalorder %s2206_s7, %s1846_s29  ;;  %p1851_p3 = scmp.lt.u32.totalorder %s2206_s7, %s2262_s3 }
 0x198   : > { %p1852_p7 = scmp.lt.u32.totalorder %s1850_s20, %s1846_s29  ;;  %p1854_p4 = scmp.lt.u32.totalorder %s1846_s29, %s2206_s7 }
 0x199   : > { %p1848_p1 = pnand %p1847_p9, %p2045_p10 }
 0x19a   : > { %p1853_p13 = por %p1852_p7, %p1851_p3 }
 0x19b   : > { %p1849_p2 = pneg %p1848_p1 }
 0x19c   : > { %p1855_p6 = por %p1854_p4, %p1853_p13 }
 0x19e   : > { %p1856_p8 = pnand %p1855_p6, %p1849_p2 }
 0x1a0   : > { %1859 = shalt.err (!%p1856_p8)
}
 0x1a1   : > { %s1927_s9 = smov 64   ;;  %s1928_s10 = smov 4  }
 0x1a2   : > { %1637 = dma.vmem_to_hbm [thread:$0]  (%p2045_p10), %s2208_s11, 2048, %s2206_s7, %s1141_s15, %s1927_s9, %s1927_s9, %s1928_s10  }
 0x1a3 PF: > { %s1170_s18 = sand.u32 1, %s1898_s12   ;;  %p2280_p12 = scmp.ne.s32.totalorder %s2270_s23, 0 }
 0x1a4   : > { %p2281_p11 = scmp.ge.s32.totalorder %s1918_s17, 2  ;;  %s1171_s26 = scalar_lea.sflag [#allocation5], %s1170_s18 }
 0x1a6   : > { %p1648_p0 = pnand %p2281_p11, %p2280_p12 }
 0x1a8   : > { %1893 = dma.done.wait (!%p1648_p0), %s1171_s26, 2048  }
 0x1a9   : > { %1895 = vsyncadd (!%p1648_p0), %s1171_s26, 4294965248  ;;  %s20_s17 = sadd.s32 1, %s1918_s17   ;;  %s2282_s12 = smov %s1902_s13 }
 0x1aa   : > { %p17_p5 = scmp.ge.s32.totalorder %s20_s17, 4   ;;  %s2283_s13 = smov %s1906_s14 }
 0x1ab   : > { %s2284_s14 = smov %s2054_s5  ;;  %s2285_s15 = smov %s1914_s16 }
 0x1ac   : > { %s2286_s16 = smov %s2288_s28  ;;  %19 = sbr.rel (!%p17_p5) target bundleno = 7 (0x7), region = 93 }
 0x1b3   :  { %1176 = vsyncpa [#allocation4], 1 }
 0x1b4   :  { %1178 = vsyncpa [#allocation4 + $0x1], 1 }
 0x1b5   :  { %1179 = vsyncpa [#allocation7], 1 }
 0x1b6   :  { %1180 = vsyncpa [#allocation5], 1 }
 0x1b7   :  { %1182 = vsyncpa [#allocation5 + $0x1], 1 }

</bundles_post_ra>
